<compile_context>
chip_gen: v7x
topology: tpu7x:2x2x1
jax: 0.10.0
libtpu: 0.0.40
codegen_flags: <defaults>
</compile_context>

<pallas_src>
import functools
import math

import jax
import jax.numpy as jnp
import numpy as np
from jax.experimental import pallas as pl
from jax.experimental.pallas import tpu as pltpu


def _attention_kernel(qpad_ref, kpad_ref, v_ref,
                      wq_ref, bq_ref, wk_ref, bk_ref,
                      wv_ref, bv_ref, wo_ref, bo_ref,
                      *out_refs, n_heads):
    out_ref = out_refs[0]
    attn_ref = out_refs[1] if len(out_refs) > 1 else None

    Bb, Lp, C_in = qpad_ref.shape            # batch chunk, padded length, C_in
    L = v_ref.shape[1]
    K = Lp - L + 1                           # causal conv kernel size
    H = n_heads
    HDk = wq_ref.shape[1]                    # H * d_keys (lane-packed)
    HDv = wv_ref.shape[1]                    # H * d_values (lane-packed)
    C_out = wo_ref.shape[1]
    dk = HDk // H
    dv = HDv // H
    M = Bb * L                               # fused batch*length rows
    G = Bb * H                               # fused (batch, head) attention blocks

    # --- projections: lane-packed single MXU dots, im2col done in-kernel -----
    # The 1/sqrt(d_keys) scale is pre-folded into wq/bq by the wrapper.
    def conv_proj(xpad_ref, w_ref, b_ref):
        width = w_ref.shape[1]
        acc = jnp.zeros((M, width), jnp.float32)
        for t in range(K):                   # K accumulating dots on shifted views
            x_t = xpad_ref[:, t:t + L, :].reshape(M, C_in)
            acc = acc + jnp.dot(x_t, w_ref[t * C_in:(t + 1) * C_in, :],
                                preferred_element_type=jnp.float32)
        return acc + b_ref[...]

    q2d = conv_proj(qpad_ref, wq_ref, bq_ref)                       # (M, H*dk)
    k2d = conv_proj(kpad_ref, wk_ref, bk_ref)                       # (M, H*dk)
    v2d = jnp.dot(v_ref[...].reshape(M, C_in), wv_ref[...],         # value k=1
                  preferred_element_type=jnp.float32) + bv_ref[...]  # (M, H*dv)

    # --- regroup lanes -> per-(batch, head) blocks for scores / PV -----------
    def to_heads(x2d, d):
        x3 = x2d.reshape(Bb, L, H * d)
        # lane slices + leading-axis stack only (no 4-D transpose)
        return jnp.stack([x3[:, :, h * d:(h + 1) * d] for h in range(H)],
                         axis=1).reshape(G, L, d)                   # batch-major

    qg = to_heads(q2d, dk)
    kg = to_heads(k2d, dk)
    vg = to_heads(v2d, dv)

    # --- attention (exact softmax; 1/sqrt(dk) already folded into q) ---------
    s = jnp.einsum("gle,gse->gls", qg, kg, preferred_element_type=jnp.float32)
    m = jnp.max(s, axis=-1, keepdims=True)
    e = jnp.exp(s - m)
    p = e * (1.0 / jnp.sum(e, axis=-1, keepdims=True))   # exact: rows sum to 1
    if attn_ref is not None:
        attn_ref[...] = p.reshape(Bb, H, L, L)           # batch-major, no wrapper transpose

    o = jnp.einsum("gls,gsd->gld", p, vg, preferred_element_type=jnp.float32)

    # --- output projection: heads packed back onto lanes, ONE fused dot ------
    # Cross-head reduction happens inside the MXU f32 accumulator (contraction
    # depth H*dv) — no (H, M, C_out) intermediate, no VPU head-sum loop.
    o4 = o.reshape(Bb, H, L, dv)
    o_packed = jnp.concatenate([o4[:, h] for h in range(H)],
                               axis=-1).reshape(M, HDv)              # (M, H*dv)
    y = jnp.dot(o_packed, wo_ref[...],
                preferred_element_type=jnp.float32) + bo_ref[...]
    y = jnp.maximum(y, 0.0)                                          # ReLU
    out_ref[...] = y.reshape(Bb, L, C_out)
    # TODO(synk): resid_dropout is identity here (eval/inference); no RNG dropout.


def attention_layer_forward(queries, keys, values, params, *,
                            n_heads, d_keys, d_values, causal_kernel_size,
                            batch_block=None, return_attn=True,
                            vmem_limit_bytes=None):
    """queries/keys/values: [B, L, C_in] (channel-last). Returns (out, attn).

    batch_block sizing guidance:
      * v6e: pick Bb so Bb*L >= 256 fused rows per grid step (256-wide MXU).
      * v5e: target multiples of 128 rows.
      * v7x: Bb <= B//2 so the >=2-step "parallel" grid feeds both TensorCores,
        and budget double-buffered q/k/v blocks + the (Bb,H,L,L) attn output
        against the 64 MiB VMEM (raise vmem_limit_bytes only with headroom).
    """
    B, L, C_in = queries.shape
    K = causal_kernel_size
    KC = K * C_in
    HDk = n_heads * d_keys
    HDv = n_heads * d_values
    C_out = params["wo"].shape[-1]
    pad = K // 2
    Lp = L + 2 * pad

    Bb = B if batch_block is None else batch_block
    assert B % Bb == 0, "batch_block must divide batch"
    assert params["wv"].shape[0] == 1 and params["wo"].shape[0] == 1, \
        "kernel assumes value_kernel_size == 1 (as in the module defaults)"

    # replicate ("edge") padding only; the im2col tap-unfold happens in-kernel,
    # so q/k HBM traffic is (L+K-1)/(K*L) of the old unfolded layout (~3x less).
    q_pad = jnp.pad(queries, ((0, 0), (pad, pad), (0, 0)), mode="edge")
    k_pad = jnp.pad(keys, ((0, 0), (pad, pad), (0, 0)), mode="edge")

    # lane-packed 2D weights; fold 1/sqrt(d_keys) into the query projection.
    scale = 1.0 / math.sqrt(d_keys)
    wq2d = params["wq"].reshape(KC, HDk) * scale
    bq2d = params["bq"].reshape(1, HDk) * scale
    wk2d = params["wk"].reshape(KC, HDk)
    bk2d = params["bk"].reshape(1, HDk)
    wv2d = params["wv"].reshape(C_in, HDv)
    bv2d = params["bv"].reshape(1, HDv)
    wo2d = params["wo"].reshape(HDv, C_out)
    bo2d = params["bo"].reshape(1, C_out)

    out_shapes = [jax.ShapeDtypeStruct((B, L, C_out), jnp.float32)]
    out_specs = [pl.BlockSpec((Bb, L, C_out), lambda i: (i, 0, 0))]
    if return_attn:
        out_shapes.append(jax.ShapeDtypeStruct((B, n_heads, L, L), jnp.float32))
        out_specs.append(pl.BlockSpec((Bb, n_heads, L, L), lambda i: (i, 0, 0, 0)))

    results = pl.pallas_call(
        functools.partial(_attention_kernel, n_heads=n_heads),
        out_shape=tuple(out_shapes),
        grid_spec=pltpu.PrefetchScalarGridSpec(
            num_scalar_prefetch=0,
            grid=(B // Bb,),
            in_specs=[
                pl.BlockSpec((Bb, Lp, C_in), lambda i: (i, 0, 0)),   # q padded
                pl.BlockSpec((Bb, Lp, C_in), lambda i: (i, 0, 0)),   # k padded
                pl.BlockSpec((Bb, L, C_in), lambda i: (i, 0, 0)),    # values
                pl.BlockSpec((KC, HDk), lambda i: (0, 0)),           # wq (scaled)
                pl.BlockSpec((1, HDk), lambda i: (0, 0)),            # bq (scaled)
                pl.BlockSpec((KC, HDk), lambda i: (0, 0)),           # wk
                pl.BlockSpec((1, HDk), lambda i: (0, 0)),            # bk
                pl.BlockSpec((C_in, HDv), lambda i: (0, 0)),         # wv
                pl.BlockSpec((1, HDv), lambda i: (0, 0)),            # bv
                pl.BlockSpec((HDv, C_out), lambda i: (0, 0)),        # wo
                pl.BlockSpec((1, C_out), lambda i: (0, 0)),          # bo
            ],
            out_specs=out_specs),
        compiler_params=pltpu.CompilerParams(
            dimension_semantics=("parallel",),   # >=2 grid steps feed both v7x TCs
            vmem_limit_bytes=vmem_limit_bytes),
    )(q_pad, k_pad, values, wq2d, bq2d, wk2d, bk2d, wv2d, bv2d, wo2d, bo2d)

    out = results[0]
    attn = results[1] if return_attn else None
    return out, attn


def _reference_forward(queries, keys, values, params, *,
                       n_heads, d_keys, d_values, causal_kernel_size):
    """Pure-JAX reference mirroring the PyTorch module (eval mode)."""
    B, L, _ = queries.shape
    pad = causal_kernel_size // 2

    def conv1d(x, w, b):  # x: [B, L_padded, Cin], w: [K, Cin, Cout], b: [1, Cout]
        K = w.shape[0]
        Lo = x.shape[1] - K + 1
        acc = jnp.zeros((B, Lo, w.shape[-1]), jnp.float32)
        for t in range(K):
            acc = acc + jnp.einsum("blc,co->blo", x[:, t:t + Lo, :], w[t])
        return acc + b[0]

    q_pad = jnp.pad(queries, ((0, 0), (pad, pad), (0, 0)), mode="edge")
    k_pad = jnp.pad(keys, ((0, 0), (pad, pad), (0, 0)), mode="edge")
    q = conv1d(q_pad, params["wq"], params["bq"])
    k = conv1d(k_pad, params["wk"], params["bk"])
    v = conv1d(values, params["wv"], params["bv"])

    q = q.reshape(B, L, n_heads, d_keys)
    k = k.reshape(B, L, n_heads, d_keys)
    v = v.reshape(B, L, n_heads, d_values)
    s = jnp.einsum("blhe,bshe->bhls", q, k) / math.sqrt(d_keys)
    a = jax.nn.softmax(s, axis=-1)
    o = jnp.einsum("bhls,bshd->blhd", a, v).reshape(B, L, n_heads * d_values)
    y = jax.nn.relu(conv1d(o, params["wo"], params["bo"]))
    return y, a


if __name__ == "__main__":
    B, L = 2, 8
    input_dim = output_dim = 16
    d_model, n_heads = 32, 4
    d_keys = d_values = d_model // n_heads
    causal_kernel_size, value_kernel_size = 3, 1
    dqk = n_heads * d_keys
    dv_tot = n_heads * d_values

    key = jax.random.PRNGKey(0)
    ks = jax.random.split(key, 16)

    def u(k, shape, fan_in):
        bound = 1.0 / math.sqrt(fan_in)
        return jax.random.uniform(k, shape, jnp.float32, -bound, bound)

    # Conv1d weights pre-transposed to [kernel, in, out]; biases as [1, out].
    params = {
        "wq": u(ks[0], (causal_kernel_size, input_dim, dqk), input_dim * causal_kernel_size),
        "bq": u(ks[1], (1, dqk), input_dim * causal_kernel_size),
        "wk": u(ks[2], (causal_kernel_size, input_dim, dqk), input_dim * causal_kernel_size),
        "bk": u(ks[3], (1, dqk), input_dim * causal_kernel_size),
        "wv": u(ks[4], (value_kernel_size, input_dim, dv_tot), input_dim * value_kernel_size),
        "bv": u(ks[5], (1, dv_tot), input_dim * value_kernel_size),
        "wo": u(ks[6], (value_kernel_size, dv_tot, output_dim), dv_tot * value_kernel_size),
        "bo": u(ks[7], (1, output_dim), dv_tot * value_kernel_size),
    }

    queries = jax.random.normal(ks[8], (B, L, input_dim), jnp.float32)
    keys_in = jax.random.normal(ks[9], (B, L, input_dim), jnp.float32)
    values_in = jax.random.normal(ks[10], (B, L, input_dim), jnp.float32)

    ref_out, ref_attn = _reference_forward(
        queries, keys_in, values_in, params,
        n_heads=n_heads, d_keys=d_keys, d_values=d_values,
        causal_kernel_size=causal_kernel_size)

    # Check both the single-step grid (Bb = B) and the multi-step grid (Bb = 1,
    # which is the >=2-step "parallel" configuration that feeds both v7x TCs).
    for bb in (None, 1):
        out, attn = attention_layer_forward(
            queries, keys_in, values_in, params,
            n_heads=n_heads, d_keys=d_keys, d_values=d_values,
            causal_kernel_size=causal_kernel_size, batch_block=bb)
        jax.block_until_ready((out, attn))

        # Softmax is now exact (no approx reciprocal); the tolerance only covers
        # TPU default-precision (bf16-pass) matmul differences between the kernel
        # and the XLA reference, not algorithmic error.
        np.testing.assert_allclose(np.asarray(out), np.asarray(ref_out),
                                   atol=1e-2, rtol=1e-2)
        np.testing.assert_allclose(np.asarray(attn), np.asarray(ref_attn),
                                   atol=1e-2, rtol=1e-2)

    print("KERNEL_OK")
</pallas_src>

<mosaic_0001>
module attributes {stable_mosaic.version = 11 : i64} {
  func.func @_attention_kernel(%arg0: i32, %arg1: memref<2x10x16xf32, #tpu.memory_space<vmem>>, %arg2: memref<2x10x16xf32, #tpu.memory_space<vmem>>, %arg3: memref<2x8x16xf32, #tpu.memory_space<vmem>>, %arg4: memref<48x32xf32, #tpu.memory_space<vmem>>, %arg5: memref<1x32xf32, #tpu.memory_space<vmem>>, %arg6: memref<48x32xf32, #tpu.memory_space<vmem>>, %arg7: memref<1x32xf32, #tpu.memory_space<vmem>>, %arg8: memref<16x32xf32, #tpu.memory_space<vmem>>, %arg9: memref<1x32xf32, #tpu.memory_space<vmem>>, %arg10: memref<32x16xf32, #tpu.memory_space<vmem>>, %arg11: memref<1x16xf32, #tpu.memory_space<vmem>>, %arg12: memref<2x8x16xf32, #tpu.memory_space<vmem>>, %arg13: memref<2x4x8x8xf32, #tpu.memory_space<vmem>>) attributes {dimension_semantics = [#tpu.dimension_semantics<parallel>], iteration_bounds = array<i64: 1>, scalar_prefetch = 0 : i64, scratch_operands = 0 : i64, tpu.core_type = #tpu.core_type<tc>, window_params = [{transform_indices = @transform_0, window_bounds = array<i64: 2, 10, 16>}, {transform_indices = @transform_1, window_bounds = array<i64: 2, 10, 16>}, {transform_indices = @transform_2, window_bounds = array<i64: 2, 8, 16>}, {pipeline_mode = #tpu.pipeline_mode<synchronous>, transform_indices = @transform_3, window_bounds = array<i64: 48, 32>}, {pipeline_mode = #tpu.pipeline_mode<synchronous>, transform_indices = @transform_4, window_bounds = array<i64: 1, 32>}, {pipeline_mode = #tpu.pipeline_mode<synchronous>, transform_indices = @transform_5, window_bounds = array<i64: 48, 32>}, {pipeline_mode = #tpu.pipeline_mode<synchronous>, transform_indices = @transform_6, window_bounds = array<i64: 1, 32>}, {pipeline_mode = #tpu.pipeline_mode<synchronous>, transform_indices = @transform_7, window_bounds = array<i64: 16, 32>}, {pipeline_mode = #tpu.pipeline_mode<synchronous>, transform_indices = @transform_8, window_bounds = array<i64: 1, 32>}, {pipeline_mode = #tpu.pipeline_mode<synchronous>, transform_indices = @transform_9, window_bounds = array<i64: 32, 16>}, {pipeline_mode = #tpu.pipeline_mode<synchronous>, transform_indices = @transform_10, window_bounds = array<i64: 1, 16>}, {transform_indices = @transform_11, window_bounds = array<i64: 2, 8, 16>}, {transform_indices = @transform_12, window_bounds = array<i64: 2, 4, 8, 8>}]} {
    %cst = arith.constant 0.000000e+00 : f32
    %0 = vector.broadcast %cst : f32 to vector<16x32xf32>
    %c0 = arith.constant 0 : index
    %c0_0 = arith.constant 0 : index
    %c0_1 = arith.constant 0 : index
    %1 = vector.load %arg1[%c0, %c0_0, %c0_1] : memref<2x10x16xf32, #tpu.memory_space<vmem>>, vector<2x8x16xf32>
    %2 = vector.shape_cast %1 : vector<2x8x16xf32> to vector<16x16xf32>
    %c0_2 = arith.constant 0 : index
    %c0_3 = arith.constant 0 : index
    %3 = vector.load %arg4[%c0_2, %c0_3] : memref<48x32xf32, #tpu.memory_space<vmem>>, vector<16x32xf32>
    %cst_4 = arith.constant dense<0.000000e+00> : vector<16x32xf32>
    %4 = tpu.matmul %2, %3, %cst_4 {dimension_numbers = #tpu.dot_dimension_numbers<[1], [0], [0], [1], [0, 0, 1, 1], [], []>} : vector<16x16xf32>, vector<16x32xf32>, vector<16x32xf32> -> vector<16x32xf32>
    %5 = arith.addf %0, %4 : vector<16x32xf32>
    %c0_5 = arith.constant 0 : index
    %c1 = arith.constant 1 : index
    %c0_6 = arith.constant 0 : index
    %6 = vector.load %arg1[%c0_5, %c1, %c0_6] : memref<2x10x16xf32, #tpu.memory_space<vmem>>, vector<2x8x16xf32>
    %7 = vector.shape_cast %6 : vector<2x8x16xf32> to vector<16x16xf32>
    %c16 = arith.constant 16 : index
    %c0_7 = arith.constant 0 : index
    %8 = vector.load %arg4[%c16, %c0_7] : memref<48x32xf32, #tpu.memory_space<vmem>>, vector<16x32xf32>
    %cst_8 = arith.constant dense<0.000000e+00> : vector<16x32xf32>
    %9 = tpu.matmul %7, %8, %cst_8 {dimension_numbers = #tpu.dot_dimension_numbers<[1], [0], [0], [1], [0, 0, 1, 1], [], []>} : vector<16x16xf32>, vector<16x32xf32>, vector<16x32xf32> -> vector<16x32xf32>
    %10 = arith.addf %5, %9 : vector<16x32xf32>
    %c0_9 = arith.constant 0 : index
    %c2 = arith.constant 2 : index
    %c0_10 = arith.constant 0 : index
    %11 = vector.load %arg1[%c0_9, %c2, %c0_10] : memref<2x10x16xf32, #tpu.memory_space<vmem>>, vector<2x8x16xf32>
    %12 = vector.shape_cast %11 : vector<2x8x16xf32> to vector<16x16xf32>
    %c32 = arith.constant 32 : index
    %c0_11 = arith.constant 0 : index
    %13 = vector.load %arg4[%c32, %c0_11] : memref<48x32xf32, #tpu.memory_space<vmem>>, vector<16x32xf32>
    %cst_12 = arith.constant dense<0.000000e+00> : vector<16x32xf32>
    %14 = tpu.matmul %12, %13, %cst_12 {dimension_numbers = #tpu.dot_dimension_numbers<[1], [0], [0], [1], [0, 0, 1, 1], [], []>} : vector<16x16xf32>, vector<16x32xf32>, vector<16x32xf32> -> vector<16x32xf32>
    %15 = arith.addf %10, %14 : vector<16x32xf32>
    %c0_13 = arith.constant 0 : index
    %c0_14 = arith.constant 0 : index
    %16 = vector.load %arg5[%c0_13, %c0_14] : memref<1x32xf32, #tpu.memory_space<vmem>>, vector<1x32xf32>
    %17 = vector.broadcast %16 : vector<1x32xf32> to vector<16x32xf32>
    %18 = arith.addf %15, %17 : vector<16x32xf32>
    %cst_15 = arith.constant 0.000000e+00 : f32
    %19 = vector.broadcast %cst_15 : f32 to vector<16x32xf32>
    %c0_16 = arith.constant 0 : index
    %c0_17 = arith.constant 0 : index
    %c0_18 = arith.constant 0 : index
    %20 = vector.load %arg2[%c0_16, %c0_17, %c0_18] : memref<2x10x16xf32, #tpu.memory_space<vmem>>, vector<2x8x16xf32>
    %21 = vector.shape_cast %20 : vector<2x8x16xf32> to vector<16x16xf32>
    %c0_19 = arith.constant 0 : index
    %c0_20 = arith.constant 0 : index
    %22 = vector.load %arg6[%c0_19, %c0_20] : memref<48x32xf32, #tpu.memory_space<vmem>>, vector<16x32xf32>
    %cst_21 = arith.constant dense<0.000000e+00> : vector<16x32xf32>
    %23 = tpu.matmul %21, %22, %cst_21 {dimension_numbers = #tpu.dot_dimension_numbers<[1], [0], [0], [1], [0, 0, 1, 1], [], []>} : vector<16x16xf32>, vector<16x32xf32>, vector<16x32xf32> -> vector<16x32xf32>
    %24 = arith.addf %19, %23 : vector<16x32xf32>
    %c0_22 = arith.constant 0 : index
    %c1_23 = arith.constant 1 : index
    %c0_24 = arith.constant 0 : index
    %25 = vector.load %arg2[%c0_22, %c1_23, %c0_24] : memref<2x10x16xf32, #tpu.memory_space<vmem>>, vector<2x8x16xf32>
    %26 = vector.shape_cast %25 : vector<2x8x16xf32> to vector<16x16xf32>
    %c16_25 = arith.constant 16 : index
    %c0_26 = arith.constant 0 : index
    %27 = vector.load %arg6[%c16_25, %c0_26] : memref<48x32xf32, #tpu.memory_space<vmem>>, vector<16x32xf32>
    %cst_27 = arith.constant dense<0.000000e+00> : vector<16x32xf32>
    %28 = tpu.matmul %26, %27, %cst_27 {dimension_numbers = #tpu.dot_dimension_numbers<[1], [0], [0], [1], [0, 0, 1, 1], [], []>} : vector<16x16xf32>, vector<16x32xf32>, vector<16x32xf32> -> vector<16x32xf32>
    %29 = arith.addf %24, %28 : vector<16x32xf32>
    %c0_28 = arith.constant 0 : index
    %c2_29 = arith.constant 2 : index
    %c0_30 = arith.constant 0 : index
    %30 = vector.load %arg2[%c0_28, %c2_29, %c0_30] : memref<2x10x16xf32, #tpu.memory_space<vmem>>, vector<2x8x16xf32>
    %31 = vector.shape_cast %30 : vector<2x8x16xf32> to vector<16x16xf32>
    %c32_31 = arith.constant 32 : index
    %c0_32 = arith.constant 0 : index
    %32 = vector.load %arg6[%c32_31, %c0_32] : memref<48x32xf32, #tpu.memory_space<vmem>>, vector<16x32xf32>
    %cst_33 = arith.constant dense<0.000000e+00> : vector<16x32xf32>
    %33 = tpu.matmul %31, %32, %cst_33 {dimension_numbers = #tpu.dot_dimension_numbers<[1], [0], [0], [1], [0, 0, 1, 1], [], []>} : vector<16x16xf32>, vector<16x32xf32>, vector<16x32xf32> -> vector<16x32xf32>
    %34 = arith.addf %29, %33 : vector<16x32xf32>
    %c0_34 = arith.constant 0 : index
    %c0_35 = arith.constant 0 : index
    %35 = vector.load %arg7[%c0_34, %c0_35] : memref<1x32xf32, #tpu.memory_space<vmem>>, vector<1x32xf32>
    %36 = vector.broadcast %35 : vector<1x32xf32> to vector<16x32xf32>
    %37 = arith.addf %34, %36 : vector<16x32xf32>
    %c0_36 = arith.constant 0 : index
    %c0_37 = arith.constant 0 : index
    %c0_38 = arith.constant 0 : index
    %38 = vector.load %arg3[%c0_36, %c0_37, %c0_38] : memref<2x8x16xf32, #tpu.memory_space<vmem>>, vector<2x8x16xf32>
    %39 = vector.shape_cast %38 : vector<2x8x16xf32> to vector<16x16xf32>
    %c0_39 = arith.constant 0 : index
    %c0_40 = arith.constant 0 : index
    %40 = vector.load %arg8[%c0_39, %c0_40] : memref<16x32xf32, #tpu.memory_space<vmem>>, vector<16x32xf32>
    %cst_41 = arith.constant dense<0.000000e+00> : vector<16x32xf32>
    %41 = tpu.matmul %39, %40, %cst_41 {dimension_numbers = #tpu.dot_dimension_numbers<[1], [0], [0], [1], [0, 0, 1, 1], [], []>} : vector<16x16xf32>, vector<16x32xf32>, vector<16x32xf32> -> vector<16x32xf32>
    %c0_42 = arith.constant 0 : index
    %c0_43 = arith.constant 0 : index
    %42 = vector.load %arg9[%c0_42, %c0_43] : memref<1x32xf32, #tpu.memory_space<vmem>>, vector<1x32xf32>
    %43 = vector.broadcast %42 : vector<1x32xf32> to vector<16x32xf32>
    %44 = arith.addf %41, %43 : vector<16x32xf32>
    %45 = vector.shape_cast %18 : vector<16x32xf32> to vector<2x8x32xf32>
    %46 = vector.extract_strided_slice %45 {offsets = [0, 0, 0], sizes = [2, 8, 8], strides = [1, 1, 1]} : vector<2x8x32xf32> to vector<2x8x8xf32>
    %47 = vector.extract_strided_slice %45 {offsets = [0, 0, 8], sizes = [2, 8, 8], strides = [1, 1, 1]} : vector<2x8x32xf32> to vector<2x8x8xf32>
    %48 = vector.extract_strided_slice %45 {offsets = [0, 0, 16], sizes = [2, 8, 8], strides = [1, 1, 1]} : vector<2x8x32xf32> to vector<2x8x8xf32>
    %49 = vector.extract_strided_slice %45 {offsets = [0, 0, 24], sizes = [2, 8, 8], strides = [1, 1, 1]} : vector<2x8x32xf32> to vector<2x8x8xf32>
    %50 = vector.shape_cast %46 : vector<2x8x8xf32> to vector<2x1x8x8xf32>
    %51 = vector.shape_cast %47 : vector<2x8x8xf32> to vector<2x1x8x8xf32>
    %52 = vector.shape_cast %48 : vector<2x8x8xf32> to vector<2x1x8x8xf32>
    %53 = vector.shape_cast %49 : vector<2x8x8xf32> to vector<2x1x8x8xf32>
    %54 = tpu.concatenate %50, %51, %52, %53 in 1 : vector<2x1x8x8xf32>, vector<2x1x8x8xf32>, vector<2x1x8x8xf32>, vector<2x1x8x8xf32> -> vector<2x4x8x8xf32>
    %55 = vector.shape_cast %54 : vector<2x4x8x8xf32> to vector<8x8x8xf32>
    %56 = vector.shape_cast %37 : vector<16x32xf32> to vector<2x8x32xf32>
    %57 = vector.extract_strided_slice %56 {offsets = [0, 0, 0], sizes = [2, 8, 8], strides = [1, 1, 1]} : vector<2x8x32xf32> to vector<2x8x8xf32>
    %58 = vector.extract_strided_slice %56 {offsets = [0, 0, 8], sizes = [2, 8, 8], strides = [1, 1, 1]} : vector<2x8x32xf32> to vector<2x8x8xf32>
    %59 = vector.extract_strided_slice %56 {offsets = [0, 0, 16], sizes = [2, 8, 8], strides = [1, 1, 1]} : vector<2x8x32xf32> to vector<2x8x8xf32>
    %60 = vector.extract_strided_slice %56 {offsets = [0, 0, 24], sizes = [2, 8, 8], strides = [1, 1, 1]} : vector<2x8x32xf32> to vector<2x8x8xf32>
    %61 = vector.shape_cast %57 : vector<2x8x8xf32> to vector<2x1x8x8xf32>
    %62 = vector.shape_cast %58 : vector<2x8x8xf32> to vector<2x1x8x8xf32>
    %63 = vector.shape_cast %59 : vector<2x8x8xf32> to vector<2x1x8x8xf32>
    %64 = vector.shape_cast %60 : vector<2x8x8xf32> to vector<2x1x8x8xf32>
    %65 = tpu.concatenate %61, %62, %63, %64 in 1 : vector<2x1x8x8xf32>, vector<2x1x8x8xf32>, vector<2x1x8x8xf32>, vector<2x1x8x8xf32> -> vector<2x4x8x8xf32>
    %66 = vector.shape_cast %65 : vector<2x4x8x8xf32> to vector<8x8x8xf32>
    %67 = vector.shape_cast %44 : vector<16x32xf32> to vector<2x8x32xf32>
    %68 = vector.extract_strided_slice %67 {offsets = [0, 0, 0], sizes = [2, 8, 8], strides = [1, 1, 1]} : vector<2x8x32xf32> to vector<2x8x8xf32>
    %69 = vector.extract_strided_slice %67 {offsets = [0, 0, 8], sizes = [2, 8, 8], strides = [1, 1, 1]} : vector<2x8x32xf32> to vector<2x8x8xf32>
    %70 = vector.extract_strided_slice %67 {offsets = [0, 0, 16], sizes = [2, 8, 8], strides = [1, 1, 1]} : vector<2x8x32xf32> to vector<2x8x8xf32>
    %71 = vector.extract_strided_slice %67 {offsets = [0, 0, 24], sizes = [2, 8, 8], strides = [1, 1, 1]} : vector<2x8x32xf32> to vector<2x8x8xf32>
    %72 = vector.shape_cast %68 : vector<2x8x8xf32> to vector<2x1x8x8xf32>
    %73 = vector.shape_cast %69 : vector<2x8x8xf32> to vector<2x1x8x8xf32>
    %74 = vector.shape_cast %70 : vector<2x8x8xf32> to vector<2x1x8x8xf32>
    %75 = vector.shape_cast %71 : vector<2x8x8xf32> to vector<2x1x8x8xf32>
    %76 = tpu.concatenate %72, %73, %74, %75 in 1 : vector<2x1x8x8xf32>, vector<2x1x8x8xf32>, vector<2x1x8x8xf32>, vector<2x1x8x8xf32> -> vector<2x4x8x8xf32>
    %77 = vector.shape_cast %76 : vector<2x4x8x8xf32> to vector<8x8x8xf32>
    "tpu.trace_start"() <{level = 10 : i32, message = "gle,gse->gls"}> : () -> ()
    %cst_44 = arith.constant dense<0.000000e+00> : vector<8x8x8xf32>
    %78 = tpu.matmul %55, %66, %cst_44 {dimension_numbers = #tpu.dot_dimension_numbers<[2], [2], [1], [1], [0, 0, 0, 1, 1, 1], [0], [0]>} : vector<8x8x8xf32>, vector<8x8x8xf32>, vector<8x8x8xf32> -> vector<8x8x8xf32>
    "tpu.trace_stop"() : () -> ()
    %cst_45 = arith.constant dense<0xFF800000> : vector<8x8xf32>
    %79 = vector.multi_reduction <maximumf>, %78, %cst_45 [2] : vector<8x8x8xf32> to vector<8x8xf32>
    %80 = vector.shape_cast %79 : vector<8x8xf32> to vector<8x8x1xf32>
    %81 = vector.broadcast %80 : vector<8x8x1xf32> to vector<8x8x8xf32>
    %82 = arith.subf %78, %81 : vector<8x8x8xf32>
    %83 = math.exp %82 : vector<8x8x8xf32>
    %cst_46 = arith.constant dense<0.000000e+00> : vector<8x8xf32>
    %84 = vector.multi_reduction <add>, %83, %cst_46 [2] : vector<8x8x8xf32> to vector<8x8xf32>
    %85 = vector.shape_cast %84 : vector<8x8xf32> to vector<8x8x1xf32>
    %cst_47 = arith.constant 1.000000e+00 : f32
    %86 = vector.broadcast %cst_47 : f32 to vector<8x8x1xf32>
    %87 = arith.divf %86, %85 : vector<8x8x1xf32>
    %88 = vector.broadcast %87 : vector<8x8x1xf32> to vector<8x8x8xf32>
    %89 = arith.mulf %83, %88 : vector<8x8x8xf32>
    %90 = vector.shape_cast %89 : vector<8x8x8xf32> to vector<2x4x8x8xf32>
    %c0_48 = arith.constant 0 : index
    %c0_49 = arith.constant 0 : index
    %c0_50 = arith.constant 0 : index
    %c0_51 = arith.constant 0 : index
    %91 = vector.load %arg13[%c0_48, %c0_49, %c0_50, %c0_51] : memref<2x4x8x8xf32, #tpu.memory_space<vmem>>, vector<2x4x8x8xf32>
    tpu.vector_store %arg13[%c0_48, %c0_49, %c0_50, %c0_51], %90 {strides = array<i32>} : memref<2x4x8x8xf32, #tpu.memory_space<vmem>>, vector<2x4x8x8xf32>,
    "tpu.trace_start"() <{level = 10 : i32, message = "gls,gsd->gld"}> : () -> ()
    %cst_52 = arith.constant dense<0.000000e+00> : vector<8x8x8xf32>
    %92 = tpu.matmul %89, %77, %cst_52 {dimension_numbers = #tpu.dot_dimension_numbers<[2], [1], [1], [2], [0, 0, 0, 1, 1, 2], [0], [0]>} : vector<8x8x8xf32>, vector<8x8x8xf32>, vector<8x8x8xf32> -> vector<8x8x8xf32>
    "tpu.trace_stop"() : () -> ()
    %93 = vector.shape_cast %92 : vector<8x8x8xf32> to vector<2x4x8x8xf32>
    %94 = vector.extract_strided_slice %93 {offsets = [0, 0, 0, 0], sizes = [2, 1, 8, 8], strides = [1, 1, 1, 1]} : vector<2x4x8x8xf32> to vector<2x1x8x8xf32>
    %95 = vector.shape_cast %94 : vector<2x1x8x8xf32> to vector<2x8x8xf32>
    %96 = vector.extract_strided_slice %93 {offsets = [0, 1, 0, 0], sizes = [2, 1, 8, 8], strides = [1, 1, 1, 1]} : vector<2x4x8x8xf32> to vector<2x1x8x8xf32>
    %97 = vector.shape_cast %96 : vector<2x1x8x8xf32> to vector<2x8x8xf32>
    %98 = vector.extract_strided_slice %93 {offsets = [0, 2, 0, 0], sizes = [2, 1, 8, 8], strides = [1, 1, 1, 1]} : vector<2x4x8x8xf32> to vector<2x1x8x8xf32>
    %99 = vector.shape_cast %98 : vector<2x1x8x8xf32> to vector<2x8x8xf32>
    %100 = vector.extract_strided_slice %93 {offsets = [0, 3, 0, 0], sizes = [2, 1, 8, 8], strides = [1, 1, 1, 1]} : vector<2x4x8x8xf32> to vector<2x1x8x8xf32>
    %101 = vector.shape_cast %100 : vector<2x1x8x8xf32> to vector<2x8x8xf32>
    %102 = tpu.concatenate %95, %97, %99, %101 in 2 : vector<2x8x8xf32>, vector<2x8x8xf32>, vector<2x8x8xf32>, vector<2x8x8xf32> -> vector<2x8x32xf32>
    %103 = vector.shape_cast %102 : vector<2x8x32xf32> to vector<16x32xf32>
    %c0_53 = arith.constant 0 : index
    %c0_54 = arith.constant 0 : index
    %104 = vector.load %arg10[%c0_53, %c0_54] : memref<32x16xf32, #tpu.memory_space<vmem>>, vector<32x16xf32>
    %cst_55 = arith.constant dense<0.000000e+00> : vector<16x16xf32>
    %105 = tpu.matmul %103, %104, %cst_55 {dimension_numbers = #tpu.dot_dimension_numbers<[1], [0], [0], [1], [0, 0, 1, 1], [], []>} : vector<16x32xf32>, vector<32x16xf32>, vector<16x16xf32> -> vector<16x16xf32>
    %c0_56 = arith.constant 0 : index
    %c0_57 = arith.constant 0 : index
    %106 = vector.load %arg11[%c0_56, %c0_57] : memref<1x16xf32, #tpu.memory_space<vmem>>, vector<1x16xf32>
    %107 = vector.broadcast %106 : vector<1x16xf32> to vector<16x16xf32>
    %108 = arith.addf %105, %107 : vector<16x16xf32>
    %cst_58 = arith.constant 0.000000e+00 : f32
    %109 = vector.broadcast %cst_58 : f32 to vector<16x16xf32>
    %110 = arith.maximumf %108, %109 : vector<16x16xf32>
    %111 = vector.shape_cast %110 : vector<16x16xf32> to vector<2x8x16xf32>
    %c0_59 = arith.constant 0 : index
    %c0_60 = arith.constant 0 : index
    %c0_61 = arith.constant 0 : index
    %112 = vector.load %arg12[%c0_59, %c0_60, %c0_61] : memref<2x8x16xf32, #tpu.memory_space<vmem>>, vector<2x8x16xf32>
    tpu.vector_store %arg12[%c0_59, %c0_60, %c0_61], %111 {strides = array<i32>} : memref<2x8x16xf32, #tpu.memory_space<vmem>>, vector<2x8x16xf32>,
    return
  }
  func.func @transform_0(%arg0: i32) -> (i32, i32, i32) {
    %c0_i32 = arith.constant 0 : i32
    %c0_i32_0 = arith.constant 0 : i32
    %c0_i32_1 = arith.constant 0 : i32
    return %arg0, %c0_i32, %c0_i32_0 : i32, i32, i32
  }
  func.func @transform_1(%arg0: i32) -> (i32, i32, i32) {
    %c0_i32 = arith.constant 0 : i32
    %c0_i32_0 = arith.constant 0 : i32
    %c0_i32_1 = arith.constant 0 : i32
    return %arg0, %c0_i32, %c0_i32_0 : i32, i32, i32
  }
  func.func @transform_2(%arg0: i32) -> (i32, i32, i32) {
    %c0_i32 = arith.constant 0 : i32
    %c0_i32_0 = arith.constant 0 : i32
    %c0_i32_1 = arith.constant 0 : i32
    return %arg0, %c0_i32, %c0_i32_0 : i32, i32, i32
  }
  func.func @transform_3(%arg0: i32) -> (i32, i32) {
    %c0_i32 = arith.constant 0 : i32
    %c0_i32_0 = arith.constant 0 : i32
    %c0_i32_1 = arith.constant 0 : i32
    return %c0_i32, %c0_i32_0 : i32, i32
  }
  func.func @transform_4(%arg0: i32) -> (i32, i32) {
    %c0_i32 = arith.constant 0 : i32
    %c0_i32_0 = arith.constant 0 : i32
    %c0_i32_1 = arith.constant 0 : i32
    return %c0_i32, %c0_i32_0 : i32, i32
  }
  func.func @transform_5(%arg0: i32) -> (i32, i32) {
    %c0_i32 = arith.constant 0 : i32
    %c0_i32_0 = arith.constant 0 : i32
    %c0_i32_1 = arith.constant 0 : i32
    return %c0_i32, %c0_i32_0 : i32, i32
  }
  func.func @transform_6(%arg0: i32) -> (i32, i32) {
    %c0_i32 = arith.constant 0 : i32
    %c0_i32_0 = arith.constant 0 : i32
    %c0_i32_1 = arith.constant 0 : i32
    return %c0_i32, %c0_i32_0 : i32, i32
  }
  func.func @transform_7(%arg0: i32) -> (i32, i32) {
    %c0_i32 = arith.constant 0 : i32
    %c0_i32_0 = arith.constant 0 : i32
    %c0_i32_1 = arith.constant 0 : i32
    return %c0_i32, %c0_i32_0 : i32, i32
  }
  func.func @transform_8(%arg0: i32) -> (i32, i32) {
    %c0_i32 = arith.constant 0 : i32
    %c0_i32_0 = arith.constant 0 : i32
    %c0_i32_1 = arith.constant 0 : i32
    return %c0_i32, %c0_i32_0 : i32, i32
  }
  func.func @transform_9(%arg0: i32) -> (i32, i32) {
    %c0_i32 = arith.constant 0 : i32
    %c0_i32_0 = arith.constant 0 : i32
    %c0_i32_1 = arith.constant 0 : i32
    return %c0_i32, %c0_i32_0 : i32, i32
  }
  func.func @transform_10(%arg0: i32) -> (i32, i32) {
    %c0_i32 = arith.constant 0 : i32
    %c0_i32_0 = arith.constant 0 : i32
    %c0_i32_1 = arith.constant 0 : i32
    return %c0_i32, %c0_i32_0 : i32, i32
  }
  func.func @transform_11(%arg0: i32) -> (i32, i32, i32) {
    %c0_i32 = arith.constant 0 : i32
    %c0_i32_0 = arith.constant 0 : i32
    %c0_i32_1 = arith.constant 0 : i32
    return %arg0, %c0_i32, %c0_i32_0 : i32, i32, i32
  }
  func.func @transform_12(%arg0: i32) -> (i32, i32, i32, i32) {
    %c0_i32 = arith.constant 0 : i32
    %c0_i32_0 = arith.constant 0 : i32
    %c0_i32_1 = arith.constant 0 : i32
    %c0_i32_2 = arith.constant 0 : i32
    return %arg0, %c0_i32, %c0_i32_0, %c0_i32_1 : i32, i32, i32, i32
  }
}

</mosaic_0001>

<bundles_post_ra>
// kernel: tpu_custom_call.1
= control target key start
LH: loop header
LB: loop body
LE: loop exit
PB: predicated region body
PF: predicated region fallthrough
CT: control target
= control target key end

     0   :  { %18 = vsyncpa [#allocation3], 0  ;;  %vm50_vm0 = vcmask 130048   ;;  %s2905_s0 = inlined_call_operand.vmem [shape: f32[2,10,16], index: 0, kind: input, shape index: {}]   ;;  %s2906_s1 = inlined_call_operand.vmem [shape: f32[2,10,16], index: 1, kind: input, shape index: {}]   ;;  %s2907_s2 = inlined_call_operand.vmem [shape: f32[2,8,16], index: 2, kind: input, shape index: {}]   ;;  %s2908_s3 = inlined_call_operand.vmem [shape: f32[48,32], index: 3, kind: input, shape index: {}]   ;;  %s2909_s4 = inlined_call_operand.vmem [shape: f32[1,32], index: 4, kind: input, shape index: {}]   ;;  %s2910_s5 = inlined_call_operand.vmem [shape: f32[48,32], index: 5, kind: input, shape index: {}]   ;;  %s2911_s6 = inlined_call_operand.vmem [shape: f32[1,32], index: 6, kind: input, shape index: {}]   ;;  %s2912_s7 = inlined_call_operand.vmem [shape: f32[16,32], index: 7, kind: input, shape index: {}]   ;;  %s2913_s8 = inlined_call_operand.vmem [shape: f32[1,32], index: 8, kind: input, shape index: {}]   ;;  %s2914_s9 = inlined_call_operand.vmem [shape: f32[32,16], index: 9, kind: input, shape index: {}]   ;;  %s2915_s10 = inlined_call_operand.vmem [shape: f32[1,16], index: 10, kind: input, shape index: {}]   ;;  %s2916_s11 = inlined_call_operand.hbm [shape: f32[2,8,16], index: 11, kind: output, shape index: {0}]   ;;  %s2917_s12 = inlined_call_operand.hbm [shape: f32[2,4,8,8], index: 12, kind: output, shape index: {1}]  }
   0x1   :  { %v48_v0 = vld [vmem:[%s2908_s3 + $0x10] sm:$0xff]  ;;  %v49_v1 = vld [vmem:[%s2908_s3 + $0x18] sm:$0xff]  ;;  %v46_v5 = vld [vmem:[%s2905_s0 + $0x1] sm:$0xff] }
   0x2   :  { %v315_v2 = vld [vmem:[%s2910_s5 + $0x10] sm:$0xff]  ;;  %v2406_v3 = vpack.c.bf16 %v49_v1, %v48_v0  ;;  %v316_v4 = vld [vmem:[%s2910_s5 + $0x18] sm:$0xff]  ;;  %v313_v6 = vld [vmem:[%s2906_s1 + $0x1] sm:$0xff]  ;;  %2270 = vmatprep.mubr.msk.f32.mxu0 %vm50_vm0, %v46_v5 }
   0x3   :  { %v2418_v7 = vpack.c.bf16 %v316_v4, %v315_v2  ;;  %2291 = vmatprep.mubr.msk.f32.mxu1 %vm50_vm0, %v313_v6  ;;  %v311_v8 = vld [vmem:[%s2910_s5] sm:$0xff]  ;;  %v312_v9 = vld [vmem:[%s2910_s5 + $0x8] sm:$0xff]  ;;  %v47_v12 = vld [vmem:[%s2905_s0 + $0x11] sm:$0xff] }
   0x4   :  { %2407 = vmatprep.subr.bf16.mxu0 %v2406_v3  ;;  %v44_v10 = vld [vmem:[%s2908_s3] sm:$0xff]  ;;  %v45_v11 = vld [vmem:[%s2908_s3 + $0x8] sm:$0xff]  ;;  %v2422_v13 = vpack.c.bf16 %v312_v9, %v311_v8  ;;  %v314_v15 = vld [vmem:[%s2906_s1 + $0x11] sm:$0xff] }
   0x5   :  { %2419 = vmatprep.subr.bf16.mxu1 %v2418_v7  ;;  %2409 = vmatpush3.bf16.msra.mxu0 %v2406_v3  ;;  %v2410_v14 = vpack.c.bf16 %v45_v11, %v44_v10  ;;  %v481_v16 = vld [vmem:[%s2910_s5 + $0x20] sm:$0xff]  ;;  %v482_v17 = vld [vmem:[%s2910_s5 + $0x28] sm:$0xff] }
   0x6   :  { %2421 = vmatpush3.bf16.msra.mxu1 %v2418_v7  ;;  %v42_v18 = vld [vmem:[%s2905_s0] sm:$0xff]  ;;  %v2426_v19 = vpack.c.bf16 %v482_v17, %v481_v16  ;;  %v216_v21 = vld [vmem:[%s2908_s3 + $0x28] sm:$0xff] }
   0x7   :  { %2423 = vmatprep.subr.bf16.mxu1 %v2422_v13  ;;  %2411 = vmatprep.subr.bf16.mxu0 %v2410_v14  ;;  %v215_v20 = vld [vmem:[%s2908_s3 + $0x20] sm:$0xff] }
   0x8   :  { %2271 = vmatmul.mubr.msk.f32.vlgmr.msra.gmra.mrb[0].mxu0 %vm50_vm0, %v47_v12  ;;  %v309_v22 = vld [vmem:[%s2906_s1] sm:$0xff]  ;;  %v2414_v23 = vpack.c.bf16 %v216_v21, %v215_v20 }
   0x9   :  { %2292 = vmatmul.mubr.msk.f32.vlgmr.msra.gmra.mrb[0].mxu1 %vm50_vm0, %v314_v15  ;;  %2413 = vmatpush3.bf16.msra.mxu0 %v2410_v14 }
   0xa   :  { %19 = vsyncpa [#allocation5], 0  ;;  %2425 = vmatpush3.bf16.msra.mxu1 %v2422_v13  ;;  %2277 = vmatprep.mubr.msk.f32.mxu0 %vm50_vm0, %v42_v18  ;;  %v43_v24 = vld [vmem:[%s2905_s0 + $0x10] sm:$0xff]  ;;  %v213_v26 = vld [vmem:[%s2905_s0 + $0x2] sm:$0xff]  ;;  %v2541_v30 = vmov 0.0   ;;  %vm2542_vm1 = vmmov 0  }
   0xb   :  { %2298 = vmatprep.mubr.msk.f32.mxu1 %vm50_vm0, %v309_v22  ;;  %2427 = vmatprep.subr.bf16.mxu1 %v2426_v19  ;;  %v310_v25 = vld [vmem:[%s2906_s1 + $0x10] sm:$0xff]  ;;  %v479_v27 = vld [vmem:[%s2906_s1 + $0x2] sm:$0xff]  ;;  %v2162_v36 = vld [vmem:[%s2909_s4] ss:$0 sm:$0xff]  ;;  %vm715_vm2 = vcmask 64512   ;;  %s2544_s4 = smov 112  }
   0xc   :  { %2415 = vmatprep.subr.bf16.mxu0 %v2414_v23  ;;  %v214_v28 = vld [vmem:[%s2905_s0 + $0x12] sm:$0xff]  ;;  %v577_v31 = vld [vmem:[%s2912_s7] sm:$0xff]  ;;  %v578_v32 = vld [vmem:[%s2912_s7 + $0x8] sm:$0xff]  ;;  %s2546_s25 = smov 8   ;;  %s2547_s30 = smov 16   ;;  %vm2024_vm3 = vcmask 195584  }
   0xd   :  { %v480_v29 = vld [vmem:[%s2906_s1 + $0x12] sm:$0xff]  ;;  %v2430_v33 = vpack.c.bf16 %v578_v32, %v577_v31  ;;  %v575_v34 = vld [vmem:[%s2907_s2] sm:$0xff]  ;;  %v576_v35 = vld [vmem:[%s2907_s2 + $0x8] sm:$0xff]  ;;  %s2543_s2 = smov 120   ;;  %s2548_s13 = smov 24   ;;  %vm2038_vm4 = vcmask 261120  }
   0xe   :  { %v2169_v37 = vld [vmem:[%s2911_s6] ss:$0 sm:$0xff]  ;;  %s2545_s6 = smov 104  }
   0xf   :  { %v2170_v58 = vld [vmem:[%s2913_s8] ss:$0 sm:$0xff] }
  0x10   :  { %2278 = vmatmul.mubr.msk.f32.vlgmr.msra.gmra.mrb[0].mxu0 %vm50_vm0, %v43_v24 }
  0x11   :  { %2299 = vmatmul.mubr.msk.f32.vlgmr.msra.gmra.mrb[0].mxu1 %vm50_vm0, %v310_v25  ;;  %2417 = vmatpush3.bf16.msra.mxu0 %v2414_v23 }
  0x12   :  { %2429 = vmatpush3.bf16.msra.mxu1 %v2426_v19  ;;  %2284 = vmatprep.mubr.msk.f32.mxu0 %vm50_vm0, %v213_v26 }
  0x13   :  { %2305 = vmatprep.mubr.msk.f32.mxu1 %vm50_vm0, %v479_v27  ;;  %2315 = vmatprep.subr.mxu1 %v2541_v30 }
  0x14   :  { %2431 = vmatprep.subr.bf16.mxu0 %v2430_v33 }
  0x18   :  { %2285 = vmatmul.mubr.msk.f32.vlgmr.msra.gmra.mrb[0].mxu0 %vm50_vm0, %v214_v28 }
  0x19   :  { %2306 = vmatmul.mubr.msk.f32.vlgmr.msra.gmra.mrb[0].mxu1 %vm50_vm0, %v480_v29  ;;  %2433 = vmatpush3.bf16.msra.mxu0 %v2430_v33 }
  0x1a   :  { %2317 = vmatprep.mubr.msk.f32.mxu1 %vm2542_vm1, %v2541_v30  ;;  %2320 = vmatprep.subr.mxu0 %v2541_v30 }
  0x1b   :  { %2312 = vmatprep.mubr.msk.f32.mxu0 %vm50_vm0, %v575_v34 }
  0x1c   :  { %2313 = vmatmul.mubr.msk.f32.vlgmr.msra.gmra.mrb[2].mxu0 %vm50_vm0, %v576_v35 }
  0x1d   :  { %2322 = vmatprep.mubr.msk.f32.mxu0 %vm2542_vm1, %v2541_v30 }
  0xeb   :  { %v2286_v38 = vpop.f32.mrb[0].mxu0 }
  0xec   :  { %v308_v39 = vadd.f32 %v2286_v38, %v2162_v36  ;;  %v2307_v40 = vpop.f32.mrb[0].mxu1  ;;  %v289_v41 = vpop.f32.mrb[1].mxu0 }
  0xed   :  { %v574_v42 = vadd.f32 %v2307_v40, %v2169_v37  ;;  %v555_v43 = vpop.f32.mrb[1].mxu1  ;;  %v307_v45 = vadd.f32 %v2162_v36, %v289_v41 }
  0xee   :  { %v573_v44 = vadd.f32 %v2169_v37, %v555_v43  ;;  %671 = vrot.lane.b32.xlu1 %v308_v39, %s2543_s2 }
  0xef   :  { %685 = vrot.lane.b32.xlu0 %v574_v42, %s2543_s2  ;;  %v2314_v59 = vpop.f32.mrb[2].mxu0 }
  0xf0   :  { %2316 = vmatpush3.xpose.msk.msra.mxu1 %vm715_vm2, %v573_v44  ;;  %v2782_v60 = vadd.f32 %v2314_v59, %v2170_v58  ;;  %v658_v61 = vpop.f32.mrb[3].mxu0 }
  0xf1   :  { %2325 = vmatprep.subr.mxu1 %v2541_v30  ;;  %v659_v62 = vadd.f32 %v2170_v58, %v658_v61 }
  0xf2   :  { %687 = vrot.lane.b32.xlu1 %v573_v44, %s2544_s4 }
  0xf3   :  { %683 = vrot.lane.b32.xlu0 %v573_v44, %s2543_s2  ;;  %2318 = vmatmul.mubr.msk.f32.vlgmr.msra.gmra.mrb[2].mxu1 %vm715_vm2, %v307_v45 }
  0xf4   :  { %2327 = vmatprep.mubr.msk.f32.mxu1 %vm2542_vm1, %v2541_v30 }
  0xf6   :  { %691 = vrot.lane.b32.xlu1 %v573_v44, %s2545_s6 }
  0xf7   :  { %669 = vrot.lane.b32.xlu0 %v307_v45, %s2543_s2 }
  0xfa   :  { %677 = vrot.lane.b32.xlu1 %v307_v45, %s2545_s6 }
  0xfb   :  { %673 = vrot.lane.b32.xlu0 %v307_v45, %s2544_s4 }
  0xfe   :  { %693 = vrot.lane.b32.xlu1 %v574_v42, %s2545_s6 }
  0xff   :  { %689 = vrot.lane.b32.xlu0 %v574_v42, %s2544_s4 }
 0x102   :  { %679 = vrot.lane.b32.xlu1 %v308_v39, %s2545_s6 }
 0x103   :  { %675 = vrot.lane.b32.xlu0 %v308_v39, %s2544_s4 }
 0x160   :  { %v672_v46 = vpop.permute.xlu1 %671 }
 0x161   :  { %v686_v47 = vpop.permute.xlu0 %685 }
 0x164   :  { %v688_v48 = vpop.permute.xlu1 %687 }
 0x165   :  { %v684_v49 = vpop.permute.xlu0 %683  ;;  %2326 = vmatpush3.xpose.msk.msra.mxu1 %vm715_vm2, %v688_v48 }
 0x166   :  { %2321 = vmatpush3.xpose.msk.msra.mxu0 %vm715_vm2, %v684_v49  ;;  %2335 = vmatprep.subr.mxu1 %v2541_v30 }
 0x167   :  { %2330 = vmatprep.subr.mxu0 %v2541_v30 }
 0x168   :  { %v692_v50 = vpop.permute.xlu1 %691 }
 0x169   :  { %v670_v51 = vpop.permute.xlu0 %669 }
 0x16a   :  { %2323 = vmatmul.mubr.msk.f32.vlgmr.msra.gmra.mrb[4].mxu0 %vm715_vm2, %v670_v51 }
 0x16b   :  { %2331 = vmatpush3.xpose.msk.msra.mxu0 %vm715_vm2, %v692_v50  ;;  %2332 = vmatprep.mubr.msk.f32.mxu0 %vm2542_vm1, %v2541_v30 }
 0x16c   :  { %v678_v52 = vpop.permute.xlu1 %677  ;;  %2340 = vmatprep.subr.mxu0 %v2541_v30 }
 0x16d   :  { %v674_v53 = vpop.permute.xlu0 %673 }
 0x16e   :  { %2328 = vmatmul.mubr.msk.f32.vlgmr.msra.gmra.mrb[4].mxu1 %vm715_vm2, %v674_v53  ;;  %2333 = vmatmul.mubr.msk.f32.vlgmr.msra.gmra.mrb[6].mxu0 %vm715_vm2, %v678_v52 }
 0x16f   :  { %2336 = vmatpush3.xpose.msk.msra.mxu1 %vm715_vm2, %v574_v42  ;;  %2341 = vmatpush3.xpose.msk.msra.mxu0 %vm715_vm2, %v686_v47 }
 0x170   :  { %v694_v54 = vpop.permute.xlu1 %693  ;;  %2342 = vmatprep.mubr.msk.f32.mxu0 %vm2542_vm1, %v2541_v30  ;;  %2350 = vmatprep.subr.mxu0 %v2541_v30 }
 0x171   :  { %v690_v55 = vpop.permute.xlu0 %689  ;;  %2337 = vmatprep.mubr.msk.f32.mxu1 %vm2542_vm1, %v2541_v30  ;;  %2345 = vmatprep.subr.mxu1 %v2541_v30 }
 0x172   :  { %2338 = vmatmul.mubr.msk.f32.vlgmr.msra.gmra.mrb[6].mxu1 %vm715_vm2, %v308_v39  ;;  %2343 = vmatmul.mubr.msk.f32.vlgmr.msra.gmra.mrb[8].mxu0 %vm715_vm2, %v672_v46 }
 0x173   :  { %2346 = vmatpush3.xpose.msk.msra.mxu1 %vm715_vm2, %v690_v55  ;;  %2351 = vmatpush3.xpose.msk.msra.mxu0 %vm715_vm2, %v694_v54 }
 0x174   :  { %v680_v56 = vpop.permute.xlu1 %679  ;;  %2352 = vmatprep.mubr.msk.f32.mxu0 %vm2542_vm1, %v2541_v30  ;;  %2347 = vmatprep.mubr.msk.f32.mxu1 %vm2542_vm1, %v2541_v30 }
 0x175   :  { %v676_v57 = vpop.permute.xlu0 %675  ;;  %2355 = vmatprep.subr.mxu1 %v2541_v30  ;;  %2360 = vmatprep.subr.mxu0 %v2541_v30 }
 0x176   :  { %2348 = vmatmul.mubr.msk.f32.vlgmr.msra.gmra.mrb[8].mxu1 %vm715_vm2, %v676_v57  ;;  %2353 = vmatmul.mubr.msk.f32.vlgmr.msra.gmra.mrb[10].mxu0 %vm715_vm2, %v680_v56 }
 0x177   :  { %2357 = vmatprep.mubr.msk.f32.mxu1 %vm2542_vm1, %v2541_v30  ;;  %2362 = vmatprep.mubr.msk.f32.mxu0 %vm2542_vm1, %v2541_v30 }
 0x178   :  { %2356 = vmatpush3.msra.mxu1 %v659_v62 }
 0x179   :  { %2365 = vmatprep.subr.mxu1 %v2541_v30 }
 0x1c6   :  { %v786_v63 = vpop.f32.mrb[2].mxu1 }
 0x1c7   :  { %v2319_v0 = vpop.f32.mrb[3].mxu1  ;;  %v1308_v1 = vsel %vm715_vm2, %v786_v63, -inf }
 0x1c8   :  { %1309 = vmax.xlane.f32.xlu0 %v1308_v1 }
 0x23d   :  { %v860_v2 = vpop.f32.mrb[4].mxu0 }
 0x23e   :  { %v2324_v3 = vpop.f32.mrb[5].mxu0  ;;  %v1311_v4 = vsel %vm715_vm2, %v860_v2, -inf }
 0x23f   :  { %1312 = vmax.xlane.f32.xlu1 %v1311_v4 }
 0x241   :  { %v934_v5 = vpop.f32.mrb[4].mxu1  ;;  %v1008_v6 = vpop.f32.mrb[6].mxu0 }
 0x242   :  { %v2329_v7 = vpop.f32.mrb[5].mxu1  ;;  %v2334_v8 = vpop.f32.mrb[7].mxu0  ;;  %v1314_v9 = vsel %vm715_vm2, %v934_v5, -inf  ;;  %v1317_v14 = vsel %vm715_vm2, %v1008_v6, -inf }
 0x243   :  { %1315 = vmax.xlane.f32.xlu0 %v1314_v9 }
 0x245   :  { %v1082_v10 = vpop.f32.mrb[6].mxu1  ;;  %v1156_v11 = vpop.f32.mrb[8].mxu0 }
 0x246   :  { %v2339_v12 = vpop.f32.mrb[7].mxu1  ;;  %v2344_v13 = vpop.f32.mrb[9].mxu0  ;;  %v1320_v15 = vsel %vm715_vm2, %v1082_v10, -inf  ;;  %v1323_v20 = vsel %vm715_vm2, %v1156_v11, -inf }
 0x247   :  { %1318 = vmax.xlane.f32.xlu0 %v1317_v14  ;;  %1321 = vmax.xlane.f32.xlu1 %v1320_v15 }
 0x249   :  { %v1230_v16 = vpop.f32.mrb[8].mxu1  ;;  %v1304_v17 = vpop.f32.mrb[10].mxu0 }
 0x24a   :  { %v2349_v18 = vpop.f32.mrb[9].mxu1  ;;  %v2354_v19 = vpop.f32.mrb[11].mxu0  ;;  %v1326_v21 = vsel %vm715_vm2, %v1230_v16, -inf  ;;  %v1329_v22 = vsel %vm715_vm2, %v1304_v17, -inf }
 0x24b   :  { %1324 = vmax.xlane.f32.xlu0 %v1323_v20  ;;  %1327 = vmax.xlane.f32.xlu1 %v1326_v21 }
 0x24f   :  { %1330 = vmax.xlane.f32.xlu0 %v1329_v22 }
 0x255   :  { %v1310_v23 = vpop.xlane.xlu0 %1309 }
 0x256   :  { %v1332_v24 = vsub.f32 %v786_v63, %v1310_v23 }
 0x258   :  { %v1340_v25 = vmul.f32 1.442695, %v1332_v24 }
 0x25a   :  { %2461 = vpow2.f32 %v1340_v25 }
 0x25c   :  { %697 = vrot.lane.b32.xlu1 %v659_v62, %s2543_s2 }
 0x260   :  { %709 = vrot.lane.b32.xlu1 %v659_v62, %s2545_s6 }
 0x264   :  { %699 = vrot.lane.b32.xlu1 %v2782_v60, %s2543_s2  ;;  %v2462_v26 = vpop.eup %2461 }
 0x265   :  { %703 = vrot.lane.b32.xlu0 %v659_v62, %s2544_s4  ;;  %v1356_v27 = vsel %vm715_vm2, %v2462_v26, 0.0 }
 0x288   :  { %1357 = vadd.xlane.f32.xlu1 %v1356_v27 }
 0x2cc   :  { %v1313_v28 = vpop.xlane.xlu1 %1312 }
 0x2cd   :  { %v1333_v29 = vsub.f32 %v860_v2, %v1313_v28 }
 0x2cf   :  { %v1342_v31 = vmul.f32 1.442695, %v1333_v29 }
 0x2d0   :  { %v1316_v32 = vpop.xlane.xlu0 %1315 }
 0x2d1   :  { %2463 = vpow2.f32 %v1342_v31  ;;  %v1334_v33 = vsub.f32 %v934_v5, %v1316_v32 }
 0x2d3   :  { %v1344_v34 = vmul.f32 1.442695, %v1334_v33 }
 0x2d4   :  { %v1319_v35 = vpop.xlane.xlu0 %1318  ;;  %v1322_v36 = vpop.xlane.xlu1 %1321 }
 0x2d5   :  { %2465 = vpow2.f32 %v1344_v34  ;;  %v1335_v37 = vsub.f32 %v1008_v6, %v1319_v35  ;;  %v1336_v38 = vsub.f32 %v1082_v10, %v1322_v36  ;;  %v2027_v34 = vld [vmem:[%s2914_s9] sm:$0xff]  ;;  %v2028_v35 = vld [vmem:[%s2914_s9 + $0x8] sm:$0xff] }
 0x2d7   :  { %v1346_v39 = vmul.f32 1.442695, %v1335_v37  ;;  %v1348_v40 = vmul.f32 1.442695, %v1336_v38  ;;  %v2029_v38 = vld [vmem:[%s2914_s9 + $0x10] sm:$0xff] }
 0x2d8   :  { %v1325_v41 = vpop.xlane.xlu0 %1324  ;;  %v1328_v42 = vpop.xlane.xlu1 %1327 }
 0x2d9   :  { %2467 = vpow2.f32 %v1346_v39  ;;  %v1337_v43 = vsub.f32 %v1156_v11, %v1325_v41  ;;  %v1338_v44 = vsub.f32 %v1230_v16, %v1328_v42  ;;  %v2030_v39 = vld [vmem:[%s2914_s9 + $0x18] sm:$0xff]  ;;  %s2549_s9 = smov [#allocation4]  }
 0x2da   :  { %2469 = vpow2.f32 %v1348_v40  ;;  %v2438_v41 = vpack.c.bf16 %v2030_v39, %v2029_v38  ;;  %s2141_s14 = sshll.u32 %s2549_s9, 4  ;;  %s2142_s14 = int_to_ptr.vmem [resolvable:$true] %s2141_s14 }
 0x2db   :  { %v2464_v45 = vpop.eup %2463  ;;  %v1350_v46 = vmul.f32 1.442695, %v1337_v43  ;;  %v1352_v47 = vmul.f32 1.442695, %v1338_v44  ;;  %s2493_s0 = scalar_lea.vmem %s2142_s14, 1024  ;;  %p2498_p1 = scmp.lt.s32.totalorder %s2142_s14, %s2142_s14 }
 0x2dc   :  { %v1331_v48 = vpop.xlane.xlu0 %1330  ;;  %v698_v49 = vpop.permute.xlu1 %697  ;;  %v1359_v50 = vsel %vm715_vm2, %v2464_v45, 0.0  ;;  %p2494_p0 = scmp.ne.s32.totalorder %s2142_s14, %s2493_s0  ;;  %p2499_p2 = scmp.lt.s32.totalorder %s2493_s0, %s2493_s0 }
 0x2dd   :  { %2471 = vpow2.f32 %v1350_v46  ;;  %v1339_v51 = vsub.f32 %v1304_v17, %v1331_v48  ;;  %1360 = vadd.xlane.f32.xlu0 %v1359_v50  ;;  %2361 = vmatpush3.msra.mxu0 %v698_v49 }
 0x2de   :  { %2473 = vpow2.f32 %v1352_v47  ;;  %2370 = vmatprep.subr.mxu0 %v2541_v30  ;;  %p2500_p3 = por %p2499_p2, %p2498_p1 }
 0x2df   :  { %v2466_v52 = vpop.eup %2465  ;;  %v1354_v53 = vmul.f32 1.442695, %v1339_v51 }
 0x2e0   :  { %v1362_v54 = vsel %vm715_vm2, %v2466_v52, 0.0  ;;  %v710_v2 = vpop.permute.xlu1 %709  ;;  %v704_v7 = vpop.permute.xlu0 %703  ;;  %p2501_p4 = pnand %p2500_p3, %p2494_p0 }
 0x2e1   :  { %2475 = vpow2.f32 %v1354_v53  ;;  %1363 = vadd.xlane.f32.xlu1 %v1362_v54 }
 0x2e3   :  { %v2468_v55 = vpop.eup %2467 }
 0x2e4   :  { %v2470_v56 = vpop.eup %2469  ;;  %v1365_v57 = vsel %vm715_vm2, %v2468_v55, 0.0  ;;  %v700_v3 = vpop.permute.xlu1 %699 }
 0x2e5   :  { %1366 = vadd.xlane.f32.xlu0 %v1365_v57  ;;  %v1368_v58 = vsel %vm715_vm2, %v2470_v56, 0.0 }
 0x2e6   :  { %1369 = vadd.xlane.f32.xlu1 %v1368_v58 }
 0x2e7   :  { %v2804_v59 = vpop.eup %2471 }
 0x2e8   :  { %v2806_v61 = vpop.eup %2473  ;;  %v1371_v62 = vsel %vm715_vm2, %v2804_v59, 0.0 }
 0x2e9   :  { %1372 = vadd.xlane.f32.xlu0 %v1371_v62  ;;  %v1374_v63 = vsel %vm715_vm2, %v2806_v61, 0.0 }
 0x2ea   :  { %1375 = vadd.xlane.f32.xlu1 %v1374_v63 }
 0x2eb   :  { %v2812_v0 = vpop.eup %2475 }
 0x2ec   :  { %v1377_v1 = vsel %vm715_vm2, %v2812_v0, 0.0 }
 0x2ed   :  { %1378 = vadd.xlane.f32.xlu0 %v1377_v1 }
 0x2fb   :  { %711 = vrot.lane.b32.xlu1 %v2782_v60, %s2545_s6 }
 0x303   :  { %705 = vrot.lane.b32.xlu0 %v2782_v60, %s2544_s4 }
 0x315   :  { %v1358_v4 = vpop.xlane.xlu1 %1357 }
 0x316   :  { %2477 = vrcp.f32 %v1358_v4 }
 0x320   :  { %v2478_v5 = vpop.eup %2477 }
 0x321   :  { %v1396_v6 = vmul.f32 %v2478_v5, %v2462_v26 }
 0x323   :  { %1404 = vst.msk [vmem:[#allocation4] sm:$0xff] %vm715_vm2, %v1396_v6  ;;  %2358 = vmatmul.mubr.msk.f32.vlgmr.msra.gmra.mrb[10].mxu1 %vm715_vm2, %v1396_v6 }
 0x324   :  { %2366 = vmatpush3.msra.mxu1 %v704_v7  ;;  %2367 = vmatprep.mubr.msk.f32.mxu1 %vm2542_vm1, %v2541_v30 }
 0x325   :  { %2375 = vmatprep.subr.mxu1 %v2541_v30 }
 0x36a   :  { %v1361_v8 = vpop.xlane.xlu0 %1360 }
 0x36b   :  { %2479 = vrcp.f32 %v1361_v8 }
 0x36e   :  { %v1364_v9 = vpop.xlane.xlu1 %1363 }
 0x36f   :  { %2481 = vrcp.f32 %v1364_v9 }
 0x372   :  { %v1367_v10 = vpop.xlane.xlu0 %1366 }
 0x373   :  { %2483 = vrcp.f32 %v1367_v10  ;;  %v1370_v11 = vpop.xlane.xlu1 %1369 }
 0x374   :  { %2485 = vrcp.f32 %v1370_v11 }
 0x375   :  { %v2480_v12 = vpop.eup %2479 }
 0x376   :  { %v1397_v13 = vmul.f32 %v2480_v12, %v2464_v45  ;;  %v1373_v14 = vpop.xlane.xlu0 %1372 }
 0x377   :  { %2487 = vrcp.f32 %v1373_v14  ;;  %v1376_v15 = vpop.xlane.xlu1 %1375 }
 0x378   :  { %1405 = vst.msk [vmem:[#allocation4 + $0x8] sm:$0xff] %vm715_vm2, %v1397_v13  ;;  %2489 = vrcp.f32 %v1376_v15  ;;  %2363 = vmatmul.mubr.msk.f32.vlgmr.msra.gmra.mrb[12].mxu0 %vm715_vm2, %v1397_v13 }
 0x379   :  { %v2482_v16 = vpop.eup %2481  ;;  %2371 = vmatpush3.msra.mxu0 %v710_v2  ;;  %2372 = vmatprep.mubr.msk.f32.mxu0 %vm2542_vm1, %v2541_v30 }
 0x37a   :  { %v1398_v17 = vmul.f32 %v2482_v16, %v2466_v52  ;;  %v1379_v18 = vpop.xlane.xlu0 %1378  ;;  %2380 = vmatprep.subr.mxu0 %v2541_v30 }
 0x37b   :  { %2491 = vrcp.f32 %v1379_v18  ;;  %v712_v27 = vpop.permute.xlu1 %711 }
 0x37c   :  { %1406 = vst.msk [vmem:[#allocation4 + $0x10] sm:$0xff] %vm715_vm2, %v1398_v17  ;;  %2368 = vmatmul.mubr.msk.f32.vlgmr.msra.gmra.mrb[12].mxu1 %vm715_vm2, %v1398_v17 }
 0x37d   :  { %v2484_v19 = vpop.eup %2483  ;;  %2376 = vmatpush3.msra.mxu1 %v2782_v60  ;;  %2377 = vmatprep.mubr.msk.f32.mxu1 %vm2542_vm1, %v2541_v30 }
 0x37e   :  { %v2486_v20 = vpop.eup %2485  ;;  %v1399_v21 = vmul.f32 %v2484_v19, %v2468_v55  ;;  %2385 = vmatprep.subr.mxu1 %v2541_v30  ;;  %v706_v23 = vpop.permute.xlu0 %705 }
 0x37f   :  { %v1400_v22 = vmul.f32 %v2486_v20, %v2470_v56 }
 0x380   :  { %1407 = vst.msk [vmem:[#allocation4 + $0x18] sm:$0xff] %vm715_vm2, %v1399_v21  ;;  %2373 = vmatmul.mubr.msk.f32.vlgmr.msra.gmra.mrb[14].mxu0 %vm715_vm2, %v1399_v21 }
 0x381   :  { %v2488_v24 = vpop.eup %2487  ;;  %1408 = vst.msk [vmem:[#allocation4 + $0x20] sm:$0xff] %vm715_vm2, %v1400_v22  ;;  %2378 = vmatmul.mubr.msk.f32.vlgmr.msra.gmra.mrb[14].mxu1 %vm715_vm2, %v1400_v22  ;;  %2381 = vmatpush3.msra.mxu0 %v700_v3 }
 0x382   :  { %v2490_v60 = vpop.eup %2489  ;;  %v1401_v25 = vmul.f32 %v2488_v24, %v2804_v59  ;;  %2386 = vmatpush3.msra.mxu1 %v706_v23  ;;  %2382 = vmatprep.mubr.msk.f32.mxu0 %vm2542_vm1, %v2541_v30 }
 0x383   :  { %v1402_v26 = vmul.f32 %v2490_v60, %v2806_v61  ;;  %2387 = vmatprep.mubr.msk.f32.mxu1 %vm2542_vm1, %v2541_v30  ;;  %2390 = vmatprep.subr.mxu0 %v2541_v30 }
 0x384   :  { %1409 = vst.msk [vmem:[#allocation4 + $0x28] sm:$0xff] %vm715_vm2, %v1401_v25  ;;  %2383 = vmatmul.mubr.msk.f32.vlgmr.msra.gmra.mrb[16].mxu0 %vm715_vm2, %v1401_v25 }
 0x385   :  { %v2492_v28 = vpop.eup %2491  ;;  %1410 = vst.msk [vmem:[#allocation4 + $0x30] sm:$0xff] %vm715_vm2, %v1402_v26  ;;  %2388 = vmatmul.mubr.msk.f32.vlgmr.msra.gmra.mrb[16].mxu1 %vm715_vm2, %v1402_v26  ;;  %2391 = vmatpush3.msra.mxu0 %v712_v27 }
 0x386   :  { %v1403_v29 = vmul.f32 %v2492_v28, %v2812_v0  ;;  %2392 = vmatprep.mubr.msk.f32.mxu0 %vm2542_vm1, %v2541_v30  ;;  %v2434_v30 = vpack.c.bf16 %v2028_v35, %v2027_v34 }
 0x388   :  { %1411 = vst.msk [vmem:[#allocation4 + $0x38] sm:$0xff] %vm715_vm2, %v1403_v29  ;;  %2393 = vmatmul.mubr.msk.f32.vlgmr.msra.gmra.mrb[18].mxu0 %vm715_vm2, %v1403_v29  ;;  %2435 = vmatprep.subr.bf16.mxu1 %v2434_v30 }
 0x389   :  { %2437 = vmatpush3.bf16.msra.mxu1 %v2434_v30 }
 0x38a   :  { %2439 = vmatprep.subr.bf16.mxu1 %v2438_v41 }
 0x38d   :  { %2441 = vmatpush3.bf16.msra.mxu1 %v2438_v41 }
 0x3f6   :  { %v1481_v31 = vpop.f32.mrb[10].mxu1 }
 0x3f7   :  { %v2359_v32 = vpop.f32.mrb[11].mxu1 }
 0x44b   :  { %v1554_v33 = vpop.f32.mrb[12].mxu0 }
 0x44c   :  { %1998 = vrot.lane.b32.xlu0 %v1554_v33, %s2546_s25  ;;  %v2364_v36 = vpop.f32.mrb[13].mxu0 }
 0x44f   :  { %v1627_v37 = vpop.f32.mrb[12].mxu1 }
 0x450   :  { %2006 = vrot.lane.b32.xlu0 %v1627_v37, %s2547_s30  ;;  %v2369_v40 = vpop.f32.mrb[13].mxu1 }
 0x453   :  { %v1700_v42 = vpop.f32.mrb[14].mxu0 }
 0x454   :  { %v1773_v43 = vpop.f32.mrb[14].mxu1  ;;  %v2374_v44 = vpop.f32.mrb[15].mxu0  ;;  %2014 = vrot.lane.b32.xlu0 %v1700_v42, %s2548_s13 }
 0x455   :  { %v2379_v45 = vpop.f32.mrb[15].mxu1 }
 0x457   :  { %v1846_v46 = vpop.f32.mrb[16].mxu0 }
 0x458   :  { %v1919_v47 = vpop.f32.mrb[16].mxu1  ;;  %2000 = vrot.lane.b32.xlu1 %v1846_v46, %s2546_s25  ;;  %v2384_v48 = vpop.f32.mrb[17].mxu0 }
 0x459   :  { %v2389_v49 = vpop.f32.mrb[17].mxu1 }
 0x45b   :  { %v1992_v50 = vpop.f32.mrb[18].mxu0 }
 0x45c   :  { %v2394_v51 = vpop.f32.mrb[19].mxu0  ;;  %2008 = vrot.lane.b32.xlu1 %v1919_v47, %s2547_s30 }
 0x460   :  { %2016 = vrot.lane.b32.xlu1 %v1992_v50, %s2548_s13 }
 0x4be   :  { %v1999_v52 = vpop.permute.xlu0 %1998 }
 0x4bf   :  { %v2020_v54 = vsel %vm715_vm2, %v1481_v31, %v1999_v52 }
 0x4c2   :  { %v2007_v53 = vpop.permute.xlu0 %2006 }
 0x4c3   :  { %v2022_v55 = vsel %vm50_vm0, %v2020_v54, %v2007_v53 }
 0x4c6   :  { %v2015_v56 = vpop.permute.xlu0 %2014 }
 0x4c7   :  { %v2025_v57 = vsel %vm2024_vm3, %v2022_v55, %v2015_v56 }
 0x4c8   :  { %2403 = vmatprep.mubr.msk.f32.mxu1 %vm2038_vm4, %v2025_v57 }
 0x4ca   :  { %v2001_v58 = vpop.permute.xlu1 %2000 }
 0x4cb   :  { %v2021_v61 = vsel %vm715_vm2, %v1773_v43, %v2001_v58 }
 0x4ce   :  { %v2009_v59 = vpop.permute.xlu1 %2008 }
 0x4cf   :  { %v2023_v62 = vsel %vm50_vm0, %v2021_v61, %v2009_v59 }
 0x4d2   :  { %v2017_v63 = vpop.permute.xlu1 %2016 }
 0x4d3   :  { %v2026_v0 = vsel %vm2024_vm3, %v2023_v62, %v2017_v63 }
 0x4d4   :  { %2404 = vmatmul.mubr.msk.f32.vlgmr.msra.gmra.mrb[18].mxu1 %vm2038_vm4, %v2026_v0 }
 0x4d5   :  { %2504 = shalt.err (!%p2501_p4)
}
 0x4d6   :  { %s2505_s16 = scalar_lea.hbm %s2917_s12, 1024 }
 0x4d7   :  { %p2506_p5 = scmp.ne.s32.totalorder %s2917_s12, %s2505_s16  ;;  %p2509_p6 = scmp.lt.u32.totalorder %s2505_s16, %s2917_s12 }
 0x4d9   :  { %p2511_p7 = pnand %p2509_p6, %p2506_p5 }
 0x4db   :  { %2514 = shalt.err (!%p2511_p7)
}
 0x4dc   :  { %s2550_s20 = smov 128   ;;  %v2197_v1 = vld [vmem:[%s2915_s10] ss:$0 sm:$0xff]  ;;  %s2551_s3 = smov [#allocation2]  }
 0x4dd   :  { %2147 = dma.vmem_to_hbm [thread:$0]  %s2142_s14, 1024, %s2917_s12, [#allocation5], %s2550_s20, %s2550_s20, %s2546_s25  }
 0x4de   :  { %s2129_s21 = sshll.u32 %s2551_s3, 4  ;;  %s2130_s21 = int_to_ptr.vmem [resolvable:$true] %s2129_s21 }
 0x4df   :  { %s2515_s8 = scalar_lea.vmem %s2130_s21, 256  ;;  %p2520_p9 = scmp.lt.s32.totalorder %s2130_s21, %s2130_s21 }
 0x4e0   :  { %p2516_p8 = scmp.ne.s32.totalorder %s2130_s21, %s2515_s8  ;;  %p2521_p10 = scmp.lt.s32.totalorder %s2515_s8, %s2515_s8 }
 0x4e2   :  { %p2522_p11 = por %p2521_p10, %p2520_p9 }
 0x4e4   :  { %p2523_p12 = pnand %p2522_p11, %p2516_p8 }
 0x5a7   :  { %v2405_v2 = vpop.f32.mrb[18].mxu1 }
 0x5a8   :  { %v2117_v3 = vadd.f32 %v2405_v2, %v2197_v1  ;;  %v2111_v4 = vpop.f32.mrb[19].mxu1 }
 0x5a9   :  { %v2112_v5 = vadd.f32 %v2197_v1, %v2111_v4 }
 0x5aa   :  { %v2121_v6 = vmax.f32 %v2117_v3, 0.0 }
 0x5ab   :  { %v2120_v7 = vmax.f32 %v2112_v5, 0.0 }
 0x5ac   :  { %2123 = vst.msk [vmem:[#allocation2 + $0x8] sm:$0xff] %vm50_vm0, %v2121_v6 }
 0x5ad   :  { %2122 = vst.msk [vmem:[#allocation2] sm:$0xff] %vm50_vm0, %v2120_v7 }
 0x5ae   :  { %2526 = shalt.err (!%p2523_p12)
}
 0x5af   :  { %s2527_s22 = scalar_lea.hbm %s2916_s11, 256 }
 0x5b0   :  { %p2528_p13 = scmp.ne.s32.totalorder %s2916_s11, %s2527_s22  ;;  %p2531_p0 = scmp.lt.u32.totalorder %s2527_s22, %s2916_s11 }
 0x5b2   :  { %p2533_p1 = pnand %p2531_p0, %p2528_p13 }
 0x5b4   :  { %2536 = shalt.err (!%p2533_p1)
}
 0x5b5   :  { %2135 = dma.vmem_to_hbm [thread:$0]  %s2130_s21, 256, %s2916_s11, [#allocation3], %s2550_s20, %s2550_s20, %s2546_s25  }
 0x5b6   :  { %2537 = dma.done.wait [#allocation3], 256  }
 0x5b7   :  { %2538 = vsyncadd [#allocation3], 4294967040 }
 0x5b8   :  { %2539 = dma.done.wait [#allocation5], 1024  }
 0x5b9   :  { %2540 = vsyncadd [#allocation5], 4294966272 }
 0x5ba   :  { %2154 = vsyncpa [#allocation3], 1 }
 0x5bb   :  { %2155 = vsyncpa [#allocation5], 1 }

</bundles_post_ra>
